<compile_context>
chip_gen: v7x
topology: tpu7x:2x2x1
jax: 0.10.0
libtpu: 0.0.40
codegen_flags: <defaults>
</compile_context>

<pallas_src>
from functools import partial

import jax
import jax.numpy as jnp
from jax import lax
from jax.experimental import pallas as pl
from jax.experimental.pallas import tpu as pltpu

# Small, TPU-friendly shapes consistent with the per-step sampling in generate().
S = 4      # decode positions batched per pallas_call (parallel grid axis)
B = 8      # batch            (sublane axis)
V = 128    # vocab / logits   (lane axis)
FILTER_THRES = 0.9
TEMPERATURE = 1.0
EPS = 1e-20


def _safe_log(x):
    # mirrors retro_pytorch `log(t) = torch.log(t.clamp(min=eps))`
    return jnp.log(jnp.maximum(x, EPS))


def _topk_gumbel_sample_kernel(seed_ref, logits_ref, out_ref, *, k, inv_temp):
    """top_k filter -> gumbel noise -> argmax token id, for one decode step."""
    logits = logits_ref[...].astype(jnp.float32)              # (B, V)
    b, v = logits.shape

    # ---- gumbel noise FIRST (independent of the filter): the EUP log ops and
    #      the VPU hashing pack under the XLU-bound top-k reduce chain below. ----
    step_seed = seed_ref[pl.program_id(0)].astype(jnp.uint32)
    row = lax.broadcasted_iota(jnp.int32, (b, v), 0).astype(jnp.uint32)
    col = lax.broadcasted_iota(jnp.int32, (b, v), 1).astype(jnp.uint32)
    h = step_seed * jnp.uint32(0x9E3779B9) + row * jnp.uint32(v) + col
    # murmur3 finalizer — plain VPU int ops (no pltpu.prng_*, interpret-safe)
    h = h ^ (h >> jnp.uint32(16))
    h = h * jnp.uint32(0x85EBCA6B)
    h = h ^ (h >> jnp.uint32(13))
    h = h * jnp.uint32(0xC2B2AE35)
    h = h ^ (h >> jnp.uint32(16))
    # bits -> U[0,1): force exponent to get [1,2), bitcast, subtract 1
    fbits = (h >> jnp.uint32(9)) | jnp.uint32(0x3F800000)
    u = lax.bitcast_convert_type(fbits, jnp.float32) - 1.0
    gumbel = -_safe_log(-_safe_log(u))

    # ---- top_k filter: k-th largest per row via k UNROLLED max passes, then
    #      set everything below it to -inf (torch.topk + scatter semantics).
    #      Exact-tie rows keep all tied values — measure-zero for real logits. ----
    work = logits
    kth = None
    for _ in range(k):                     # k is a Python int -> fully unrolled
        kth = jnp.max(work, axis=-1, keepdims=True)
        work = jnp.where(work >= kth, -jnp.inf, work)
    filtered = jnp.where(logits >= kth, logits, -jnp.inf)

    if inv_temp != 1.0:                    # folded away at trace time for T == 1.0
        filtered = filtered * inv_temp
    scores = filtered + gumbel

    # ---- argmax along the lane axis (first-max-index tie rule, like torch).
    #      max + where + min is guaranteed to lower on Mosaic. ----
    ids = lax.broadcasted_iota(jnp.int32, (b, v), 1)
    row_max = jnp.max(scores, axis=-1, keepdims=True)
    idx = jnp.min(jnp.where(scores == row_max, ids, v), axis=-1, keepdims=True)
    out_ref[...] = idx.astype(jnp.int32)


def gumbel_topk_sample(logits, seeds, *, filter_thres=FILTER_THRES,
                       temperature=TEMPERATURE):
    """logits: (S, B, V) f32, seeds: (S,) int32 -> sampled ids (S, B, 1) int32."""
    s, b, v = logits.shape
    k = max(int((1.0 - filter_thres) * v), 1)            # same as torch top_k()
    kernel = partial(_topk_gumbel_sample_kernel, k=k, inv_temp=1.0 / temperature)
    return pl.pallas_call(
        kernel,
        out_shape=jax.ShapeDtypeStruct((s, b, 1), jnp.int32),
        grid_spec=pltpu.PrefetchScalarGridSpec(
            num_scalar_prefetch=1,                        # per-step seeds land in SMEM
            grid=(s,),
            in_specs=[pl.BlockSpec((None, b, v), lambda i, seed_ref: (i, 0, 0))],
            out_specs=pl.BlockSpec((None, b, 1), lambda i, seed_ref: (i, 0, 0)),
        ),
        compiler_params=pltpu.CompilerParams(
            dimension_semantics=("parallel",),            # shards steps across TCs (v7x)
        ),
    )(seeds, logits)


# TODO(synk): RETRO transformer forward (`self.retro(out, retrieved=...)`),
# faiss_index.search, and memmap-backed chunk retrieval have no in-kernel
# Pallas equivalent and are intentionally not faked here; the real end-goal is
# to fuse this sampling epilogue into the lm_head matmul kernel so the
# (B, vocab) logits never round-trip through HBM.
# TODO(synk): top_p filtering needs a full per-row sort + cumsum; only the
# default filter_fn (top_k) is implemented in-kernel.


if __name__ == "__main__":
    key = jax.random.PRNGKey(0)
    logits = jax.random.normal(key, (S, B, V), dtype=jnp.float32) * 3.0
    seeds = jnp.arange(S, dtype=jnp.int32) * 7919 + 12345   # vary seed per step

    sampled = gumbel_topk_sample(logits, seeds)
    sampled = jax.block_until_ready(sampled)

    assert sampled.shape == (S, B, 1) and sampled.dtype == jnp.int32
    assert bool(jnp.all((sampled >= 0) & (sampled < V)))

    # Sampled token must come from the top-K filtered set of its row.
    k = max(int((1.0 - FILTER_THRES) * V), 1)
    kth_largest = jnp.sort(logits, axis=-1)[..., V - k]
    chosen = jnp.take_along_axis(logits, sampled, axis=-1)[..., 0]
    assert bool(jnp.all(chosen >= kth_largest))

    print("KERNEL_OK")
</pallas_src>

<mosaic_0001>
module attributes {stable_mosaic.version = 11 : i64} {
  func.func @_topk_gumbel_sample_kernel(%arg0: i32, %arg1: memref<4xi32, #tpu.memory_space<smem>>, %arg2: memref<1x8x128xf32, #tpu.memory_space<vmem>>, %arg3: memref<1x8x1xi32, #tpu.memory_space<vmem>>) attributes {dimension_semantics = [#tpu.dimension_semantics<parallel>], iteration_bounds = array<i64: 4>, scalar_prefetch = 1 : i64, scratch_operands = 0 : i64, tpu.core_type = #tpu.core_type<tc>, window_params = [{transform_indices = @transform_0, window_bounds = array<i64: 1, 8, 128>}, {transform_indices = @transform_1, window_bounds = array<i64: 1, 8, 1>}]} {
    %c0 = arith.constant 0 : index
    %c0_0 = arith.constant 0 : index
    %c0_1 = arith.constant 0 : index
    %0 = vector.load %arg2[%c0, %c0_0, %c0_1] : memref<1x8x128xf32, #tpu.memory_space<vmem>>, vector<1x8x128xf32>
    %1 = vector.shape_cast %0 : vector<1x8x128xf32> to vector<8x128xf32>
    %2 = arith.index_cast %arg0 : i32 to index
    %3 = memref.load %arg1[%2] : memref<4xi32, #tpu.memory_space<smem>>
    %4 = tpu.iota {dimensions = array<i32: 0>} : vector<8x128xi32>
    %5 = tpu.iota {dimensions = array<i32: 1>} : vector<8x128xi32>
    %c-1640531527_i32 = arith.constant -1640531527 : i32
    %6 = arith.muli %3, %c-1640531527_i32 : i32
    %c128_i32 = arith.constant 128 : i32
    %7 = vector.broadcast %c128_i32 : i32 to vector<8x128xi32>
    %8 = arith.muli %4, %7 : vector<8x128xi32>
    %9 = vector.broadcast %6 : i32 to vector<8x128xi32>
    %10 = arith.addi %9, %8 : vector<8x128xi32>
    %11 = arith.addi %10, %5 : vector<8x128xi32>
    %c16_i32 = arith.constant 16 : i32
    %12 = vector.broadcast %c16_i32 : i32 to vector<8x128xi32>
    %13 = arith.shrui %11, %12 : vector<8x128xi32>
    %14 = arith.xori %11, %13 : vector<8x128xi32>
    %c-2048144789_i32 = arith.constant -2048144789 : i32
    %15 = vector.broadcast %c-2048144789_i32 : i32 to vector<8x128xi32>
    %16 = arith.muli %14, %15 : vector<8x128xi32>
    %c13_i32 = arith.constant 13 : i32
    %17 = vector.broadcast %c13_i32 : i32 to vector<8x128xi32>
    %18 = arith.shrui %16, %17 : vector<8x128xi32>
    %19 = arith.xori %16, %18 : vector<8x128xi32>
    %c-1028477387_i32 = arith.constant -1028477387 : i32
    %20 = vector.broadcast %c-1028477387_i32 : i32 to vector<8x128xi32>
    %21 = arith.muli %19, %20 : vector<8x128xi32>
    %c16_i32_2 = arith.constant 16 : i32
    %22 = vector.broadcast %c16_i32_2 : i32 to vector<8x128xi32>
    %23 = arith.shrui %21, %22 : vector<8x128xi32>
    %24 = arith.xori %21, %23 : vector<8x128xi32>
    %c9_i32 = arith.constant 9 : i32
    %25 = vector.broadcast %c9_i32 : i32 to vector<8x128xi32>
    %26 = arith.shrui %24, %25 : vector<8x128xi32>
    %c1065353216_i32 = arith.constant 1065353216 : i32
    %27 = vector.broadcast %c1065353216_i32 : i32 to vector<8x128xi32>
    %28 = arith.ori %26, %27 : vector<8x128xi32>
    %29 = tpu.bitcast %28 : vector<8x128xi32> -> vector<8x128xf32>
    %cst = arith.constant 1.000000e+00 : f32
    %30 = vector.broadcast %cst : f32 to vector<8x128xf32>
    %31 = arith.subf %29, %30 : vector<8x128xf32>
    %cst_3 = arith.constant 9.99999968E-21 : f32
    %32 = vector.broadcast %cst_3 : f32 to vector<8x128xf32>
    %33 = arith.maximumf %31, %32 : vector<8x128xf32>
    %34 = math.log %33 : vector<8x128xf32>
    %cst_4 = arith.constant 0.000000e+00 : f32
    %35 = vector.broadcast %cst_4 : f32 to vector<8x128xf32>
    %36 = arith.subf %35, %34 : vector<8x128xf32>
    %cst_5 = arith.constant 9.99999968E-21 : f32
    %37 = vector.broadcast %cst_5 : f32 to vector<8x128xf32>
    %38 = arith.maximumf %36, %37 : vector<8x128xf32>
    %39 = math.log %38 : vector<8x128xf32>
    %cst_6 = arith.constant 0.000000e+00 : f32
    %40 = vector.broadcast %cst_6 : f32 to vector<8x128xf32>
    %41 = arith.subf %40, %39 : vector<8x128xf32>
    %cst_7 = arith.constant dense<0xFF800000> : vector<8xf32>
    %42 = vector.multi_reduction <maximumf>, %1, %cst_7 [1] : vector<8x128xf32> to vector<8xf32>
    %43 = vector.shape_cast %42 : vector<8xf32> to vector<8x1xf32>
    %44 = vector.broadcast %43 : vector<8x1xf32> to vector<8x128xf32>
    %45 = arith.cmpf oge, %1, %44 : vector<8x128xf32>
    %cst_8 = arith.constant 0xFF800000 : f32
    %46 = vector.broadcast %cst_8 : f32 to vector<8x128xf32>
    %47 = arith.select %45, %46, %1 : vector<8x128xi1>, vector<8x128xf32>
    %cst_9 = arith.constant dense<0xFF800000> : vector<8xf32>
    %48 = vector.multi_reduction <maximumf>, %47, %cst_9 [1] : vector<8x128xf32> to vector<8xf32>
    %49 = vector.shape_cast %48 : vector<8xf32> to vector<8x1xf32>
    %50 = vector.broadcast %49 : vector<8x1xf32> to vector<8x128xf32>
    %51 = arith.cmpf oge, %47, %50 : vector<8x128xf32>
    %cst_10 = arith.constant 0xFF800000 : f32
    %52 = vector.broadcast %cst_10 : f32 to vector<8x128xf32>
    %53 = arith.select %51, %52, %47 : vector<8x128xi1>, vector<8x128xf32>
    %cst_11 = arith.constant dense<0xFF800000> : vector<8xf32>
    %54 = vector.multi_reduction <maximumf>, %53, %cst_11 [1] : vector<8x128xf32> to vector<8xf32>
    %55 = vector.shape_cast %54 : vector<8xf32> to vector<8x1xf32>
    %56 = vector.broadcast %55 : vector<8x1xf32> to vector<8x128xf32>
    %57 = arith.cmpf oge, %53, %56 : vector<8x128xf32>
    %cst_12 = arith.constant 0xFF800000 : f32
    %58 = vector.broadcast %cst_12 : f32 to vector<8x128xf32>
    %59 = arith.select %57, %58, %53 : vector<8x128xi1>, vector<8x128xf32>
    %cst_13 = arith.constant dense<0xFF800000> : vector<8xf32>
    %60 = vector.multi_reduction <maximumf>, %59, %cst_13 [1] : vector<8x128xf32> to vector<8xf32>
    %61 = vector.shape_cast %60 : vector<8xf32> to vector<8x1xf32>
    %62 = vector.broadcast %61 : vector<8x1xf32> to vector<8x128xf32>
    %63 = arith.cmpf oge, %59, %62 : vector<8x128xf32>
    %cst_14 = arith.constant 0xFF800000 : f32
    %64 = vector.broadcast %cst_14 : f32 to vector<8x128xf32>
    %65 = arith.select %63, %64, %59 : vector<8x128xi1>, vector<8x128xf32>
    %cst_15 = arith.constant dense<0xFF800000> : vector<8xf32>
    %66 = vector.multi_reduction <maximumf>, %65, %cst_15 [1] : vector<8x128xf32> to vector<8xf32>
    %67 = vector.shape_cast %66 : vector<8xf32> to vector<8x1xf32>
    %68 = vector.broadcast %67 : vector<8x1xf32> to vector<8x128xf32>
    %69 = arith.cmpf oge, %65, %68 : vector<8x128xf32>
    %cst_16 = arith.constant 0xFF800000 : f32
    %70 = vector.broadcast %cst_16 : f32 to vector<8x128xf32>
    %71 = arith.select %69, %70, %65 : vector<8x128xi1>, vector<8x128xf32>
    %cst_17 = arith.constant dense<0xFF800000> : vector<8xf32>
    %72 = vector.multi_reduction <maximumf>, %71, %cst_17 [1] : vector<8x128xf32> to vector<8xf32>
    %73 = vector.shape_cast %72 : vector<8xf32> to vector<8x1xf32>
    %74 = vector.broadcast %73 : vector<8x1xf32> to vector<8x128xf32>
    %75 = arith.cmpf oge, %71, %74 : vector<8x128xf32>
    %cst_18 = arith.constant 0xFF800000 : f32
    %76 = vector.broadcast %cst_18 : f32 to vector<8x128xf32>
    %77 = arith.select %75, %76, %71 : vector<8x128xi1>, vector<8x128xf32>
    %cst_19 = arith.constant dense<0xFF800000> : vector<8xf32>
    %78 = vector.multi_reduction <maximumf>, %77, %cst_19 [1] : vector<8x128xf32> to vector<8xf32>
    %79 = vector.shape_cast %78 : vector<8xf32> to vector<8x1xf32>
    %80 = vector.broadcast %79 : vector<8x1xf32> to vector<8x128xf32>
    %81 = arith.cmpf oge, %77, %80 : vector<8x128xf32>
    %cst_20 = arith.constant 0xFF800000 : f32
    %82 = vector.broadcast %cst_20 : f32 to vector<8x128xf32>
    %83 = arith.select %81, %82, %77 : vector<8x128xi1>, vector<8x128xf32>
    %cst_21 = arith.constant dense<0xFF800000> : vector<8xf32>
    %84 = vector.multi_reduction <maximumf>, %83, %cst_21 [1] : vector<8x128xf32> to vector<8xf32>
    %85 = vector.shape_cast %84 : vector<8xf32> to vector<8x1xf32>
    %86 = vector.broadcast %85 : vector<8x1xf32> to vector<8x128xf32>
    %87 = arith.cmpf oge, %83, %86 : vector<8x128xf32>
    %cst_22 = arith.constant 0xFF800000 : f32
    %88 = vector.broadcast %cst_22 : f32 to vector<8x128xf32>
    %89 = arith.select %87, %88, %83 : vector<8x128xi1>, vector<8x128xf32>
    %cst_23 = arith.constant dense<0xFF800000> : vector<8xf32>
    %90 = vector.multi_reduction <maximumf>, %89, %cst_23 [1] : vector<8x128xf32> to vector<8xf32>
    %91 = vector.shape_cast %90 : vector<8xf32> to vector<8x1xf32>
    %92 = vector.broadcast %91 : vector<8x1xf32> to vector<8x128xf32>
    %93 = arith.cmpf oge, %89, %92 : vector<8x128xf32>
    %cst_24 = arith.constant 0xFF800000 : f32
    %94 = vector.broadcast %cst_24 : f32 to vector<8x128xf32>
    %95 = arith.select %93, %94, %89 : vector<8x128xi1>, vector<8x128xf32>
    %cst_25 = arith.constant dense<0xFF800000> : vector<8xf32>
    %96 = vector.multi_reduction <maximumf>, %95, %cst_25 [1] : vector<8x128xf32> to vector<8xf32>
    %97 = vector.shape_cast %96 : vector<8xf32> to vector<8x1xf32>
    %98 = vector.broadcast %97 : vector<8x1xf32> to vector<8x128xf32>
    %99 = arith.cmpf oge, %95, %98 : vector<8x128xf32>
    %cst_26 = arith.constant 0xFF800000 : f32
    %100 = vector.broadcast %cst_26 : f32 to vector<8x128xf32>
    %101 = arith.select %99, %100, %95 : vector<8x128xi1>, vector<8x128xf32>
    %cst_27 = arith.constant dense<0xFF800000> : vector<8xf32>
    %102 = vector.multi_reduction <maximumf>, %101, %cst_27 [1] : vector<8x128xf32> to vector<8xf32>
    %103 = vector.shape_cast %102 : vector<8xf32> to vector<8x1xf32>
    %104 = vector.broadcast %103 : vector<8x1xf32> to vector<8x128xf32>
    %105 = arith.cmpf oge, %101, %104 : vector<8x128xf32>
    %cst_28 = arith.constant 0xFF800000 : f32
    %106 = vector.broadcast %cst_28 : f32 to vector<8x128xf32>
    %107 = arith.select %105, %106, %101 : vector<8x128xi1>, vector<8x128xf32>
    %cst_29 = arith.constant dense<0xFF800000> : vector<8xf32>
    %108 = vector.multi_reduction <maximumf>, %107, %cst_29 [1] : vector<8x128xf32> to vector<8xf32>
    %109 = vector.shape_cast %108 : vector<8xf32> to vector<8x1xf32>
    %110 = vector.broadcast %109 : vector<8x1xf32> to vector<8x128xf32>
    %111 = arith.cmpf oge, %1, %110 : vector<8x128xf32>
    %cst_30 = arith.constant 0xFF800000 : f32
    %112 = vector.broadcast %cst_30 : f32 to vector<8x128xf32>
    %113 = arith.select %111, %1, %112 : vector<8x128xi1>, vector<8x128xf32>
    %114 = arith.addf %113, %41 : vector<8x128xf32>
    %115 = tpu.iota {dimensions = array<i32: 1>} : vector<8x128xi32>
    %cst_31 = arith.constant dense<0xFF800000> : vector<8xf32>
    %116 = vector.multi_reduction <maximumf>, %114, %cst_31 [1] : vector<8x128xf32> to vector<8xf32>
    %117 = vector.shape_cast %116 : vector<8xf32> to vector<8x1xf32>
    %118 = vector.broadcast %117 : vector<8x1xf32> to vector<8x128xf32>
    %119 = arith.cmpf oeq, %114, %118 : vector<8x128xf32>
    %c128_i32_32 = arith.constant 128 : i32
    %120 = vector.broadcast %c128_i32_32 : i32 to vector<8x128xi32>
    %121 = arith.select %119, %115, %120 : vector<8x128xi1>, vector<8x128xi32>
    %cst_33 = arith.constant dense<2147483647> : vector<8xi32>
    %122 = vector.multi_reduction <minsi>, %121, %cst_33 [1] : vector<8x128xi32> to vector<8xi32>
    %123 = vector.shape_cast %122 : vector<8xi32> to vector<8x1xi32>
    %c0_34 = arith.constant 0 : index
    %c0_35 = arith.constant 0 : index
    %c0_36 = arith.constant 0 : index
    %124 = vector.load %arg3[%c0_34, %c0_35, %c0_36] : memref<1x8x1xi32, #tpu.memory_space<vmem>>, vector<1x8x1xi32>
    %125 = vector.shape_cast %124 : vector<1x8x1xi32> to vector<8x1xi32>
    %126 = vector.shape_cast %123 : vector<8x1xi32> to vector<1x8x1xi32>
    tpu.vector_store %arg3[%c0_34, %c0_35, %c0_36], %126 {strides = array<i32>} : memref<1x8x1xi32, #tpu.memory_space<vmem>>, vector<1x8x1xi32>,
    return
  }
  func.func @transform_0(%arg0: i32, %arg1: memref<4xi32, #tpu.memory_space<smem>>) -> (i32, i32, i32) {
    %c0_i32 = arith.constant 0 : i32
    %c0_i32_0 = arith.constant 0 : i32
    %c0_i32_1 = arith.constant 0 : i32
    return %arg0, %c0_i32, %c0_i32_0 : i32, i32, i32
  }
  func.func @transform_1(%arg0: i32, %arg1: memref<4xi32, #tpu.memory_space<smem>>) -> (i32, i32, i32) {
    %c0_i32 = arith.constant 0 : i32
    %c0_i32_0 = arith.constant 0 : i32
    %c0_i32_1 = arith.constant 0 : i32
    return %arg0, %c0_i32, %c0_i32_0 : i32, i32, i32
  }
}

</mosaic_0001>

<bundles_post_ra>
// kernel: tpu_custom_call.1
= control target key start
LH: loop header
LB: loop body
LE: loop exit
PB: predicated region body
PF: predicated region fallthrough
CT: control target
= control target key end

     0   :  { %s579_s0 = inlined_call_operand.hbm [shape: s32[4], index: 0, kind: input, shape index: {}]   ;;  %s580_s1 = inlined_call_operand.hbm [shape: f32[4,8,128], index: 1, kind: input, shape index: {}]   ;;  %s581_s2 = inlined_call_operand.vmem [shape: s32[4,8,1], index: 2, kind: output, shape index: {}]  }
   0x1   :  { %s357_s11 = scalar_lea.hbm %s579_s0, 16 }
   0x2   :  { %p358_p0 = scmp.ne.s32.totalorder %s579_s0, %s357_s11  ;;  %p361_p1 = scmp.lt.u32.totalorder %s357_s11, %s579_s0 }
   0x4   :  { %p363_p2 = pnand %p361_p1, %p358_p0 }
   0x6   :  { %366 = shalt.err (!%p363_p2)  }
   0x7   :  { %s435_s16 = smov [#allocation3]  }
   0x8   :  { %8 = dma.hbm_to_smem %s579_s0, 16, %s435_s16, [#allocation2] }
   0x9   :  { %413 = dma.done.wait [#allocation2], 16 }
   0xa   :  { %414 = vsyncadd [#allocation2], 4294967280 }
   0xb   :  { %10 = sfence }
   0xc   :  { %11 = vsyncpa [#allocation5], 0 }
   0xd   :  { %13 = vsyncpa [#allocation5 + $0x1], 0  ;;  %s464_s19 = smov 0   ;;  %s466_s20 = smov 0  }
   0xe   :  { %s468_s21 = smov 0   ;;  %s470_s22 = smov 0  }
   0xf LB: > { %s483_s0 = sadd.s32 4294967295, %s433_s22   ;;  %s486_s23 = sadd.s32 1, %s433_s22   ;;  %s433_s22 = sphi %s470_s22, %s589_s22   ;;  %s429_s21 = sphi %s468_s21, %s588_s21   ;;  %s425_s20 = sphi %s466_s20, %s587_s20   ;;  %s421_s19 = sphi %s464_s19, %s586_s19  }
  0x10   : > { %s23_s24 = ssub.s32 %s433_s22, %s486_s23  ;;  %s26_s25 = sadd.s32 1, %s429_s21 }
  0x11   : > { %p24_p3 = scmp.eq.s32.totalorder %s23_s24, 0  ;;  %p33_p4 = scmp.ne.s32.totalorder %s429_s21, %s425_s20 }
  0x12   : > { %p34_p5 = scmp.eq.s32.totalorder %s433_s22, 0  ;;  %p39_p6 = scmp.ne.s32.totalorder %s425_s20, %s421_s19 }
  0x13   : > { %s496_s26 = scalar_select %p24_p3, %s429_s21, %s26_s25  }
  0x14   : > { %p35_p7 = por %p34_p5, %p33_p4  ;;  %p40_p8 = scmp.eq.s32.totalorder %s483_s0, 0 }
  0x15   : > { %p319_p9 = scmp.lt.s32.totalorder %s433_s22, 4  ;;  %s89_s28 = sand.u32 1, %s429_s21  }
  0x16   : > { %p500_p10 = por %p40_p8, %p39_p6  ;;  %s305_s29 = sshll.u32 %s89_s28, 3 }
  0x17   : > { %s306_s30 = sshll.u32 %s433_s22, 7  ;;  %s93_s6 = scalar_lea.vmem [#allocation4], %s305_s29 }
  0x18   : > { %s509_s5 = scalar_lea.hbm %s580_s1, %s306_s30  ;;  %s100_s7 = sshll.u32 %s93_s6, 4  ;;  %s511_s7 = int_to_ptr.vmem [resolvable:$true] %s100_s7 }
  0x19   : > { %p513_p11 = pnand %p319_p9, %p35_p7  ;;  %s90_s9 = scalar_lea.sflag [#allocation5], %s89_s28 }
  0x1a   : > { %s367_s10 = scalar_lea.hbm %s509_s5, 128  ;;  %s372_s13 = scalar_lea.hbm %s580_s1, 512 }
  0x1b   : > { %p368_p0 = scmp.ne.s32.totalorder %s509_s5, %s367_s10  ;;  %p369_p1 = pneg %p513_p11 }
  0x1c   : > { %p373_p4 = scmp.lt.u32.totalorder %s509_s5, %s580_s1  ;;  %p374_p5 = scmp.lt.u32.totalorder %s372_s13, %s367_s10 }
  0x1d   : > { %p370_p2 = pnand %p369_p1, %p368_p0  ;;  %p376_p7 = scmp.lt.u32.totalorder %s367_s10, %s509_s5 }
  0x1e   : > { %p375_p6 = por %p374_p5, %p373_p4 }
  0x1f   : > { %p371_p3 = pneg %p370_p2 }
  0x20   : > { %p377_p8 = por %p376_p7, %p375_p6 }
  0x22   : > { %p378_p9 = pnand %p377_p8, %p371_p3 }
  0x24   : > { %381 = shalt.err (!%p378_p9)
}
  0x25   : > { %s382_s16 = scalar_lea.vmem %s511_s7, 128  ;;  %s436_s17 = smov [#allocation4]  }
  0x26   : > { %p383_p0 = scmp.ne.s32.totalorder %s511_s7, %s382_s16  ;;  %s387_s18 = sshll.u32 %s436_s17, 4  ;;  %s388_s18 = int_to_ptr.vmem [resolvable:$false] %s387_s18 }
  0x27   : > { %s389_s19 = scalar_lea.vmem %s388_s18, 256  ;;  %p390_p13 = scmp.lt.s32.totalorder %s511_s7, %s388_s18 }
  0x28   : > { %p385_p2 = pnand %p383_p0, %p369_p1  ;;  %p391_p4 = scmp.lt.s32.totalorder %s389_s19, %s382_s16 }
  0x2a   : > { %p386_p12 = pneg %p385_p2  ;;  %p392_p5 = por %p391_p4, %p390_p13 }
  0x2c   : > { %p393_p6 = pnand %p392_p5, %p386_p12 }
  0x2e   : > { %396 = shalt.err (!%p393_p6)
}
  0x2f   : > { %318 = dma.hbm_to_vmem [thread:$0]  (!%p513_p11), %s509_s5, 128, %s511_s7, %s90_s9  }
  0x30   : > { %p584_p3 = scmp.lt.s32.totalorder %s433_s22, 5  ;;  %p585_p7 = scmp.ge.s32.totalorder %s433_s22, 1 }
  0x32   : > { %p106_p1 = pnand %p585_p7, %p584_p3 }
  0x33   : > { %s111_s24 = sand.u32 (!%p106_p1), 1, %s425_s20  }
  0x34   : > { %109 = sbr.rel (%p106_p1) target bundleno = 2230 (0x8b6), region = 24  ;;  %s308_s25 = sshll.u32 (!%p106_p1), %s111_s24, 3 }
  0x35   : > { %s112_s28 = scalar_lea.sflag (!%p106_p1), [#allocation5], %s111_s24  ;;  %s115_s29 = scalar_lea.vmem (!%p106_p1), [#allocation4], %s308_s25 }
  0x3b   : > { %416 = dma.done.wait (%p500_p10), %s112_s28, 128  }
  0x3c   : > { %418 = vsyncadd (%p500_p10), %s112_s28, 4294967168  ;;  %v553_v0 = vld [vmem:[%s115_s29] sm:$0xff]  ;;  %s138_s22 = sld [smem:[#allocation3 + %s483_s0]]  ;;  %v139_v23 = vlaneseq  ;;  %p133_p10 = scmp.lt.s32.totalorder %s483_s0, 3  ;;  %vm235_vm14 = vcmask 7168  }
  0x3d   : > { %168 = vmax.xlane.f32.xlu0 %v553_v0 }
  0x3e   : > { %v140_v24 = vshrl.u32 %v139_v23, 7  ;;  %v142_v27 = vand.u32 127, %v139_v23  ;;  %s591_s0 = smov (!%p133_p10, %s483_s0), 3 }
  0x3f   : > { %s309_s30 = sshll.u32 %s591_s0, 3 }
  0x40   : > { %v144_v25 = vmul.u32 128, %v140_v24  ;;  %s136_s5 = scalar_lea.vmem %s581_s2, %s309_s30 }
  0x42   : > { %s143_s27 = smul.u32 2654435769, %s138_s22 }
  0x44   : > { %v145_v26 = vstv %s143_s27 }
  0x45   : > { %v146_v28 = vadd.s32 %v145_v26, %v144_v25 }
  0x47   : > { %v147_v29 = vadd.s32 %v146_v28, %v142_v27 }
  0x49   : > { %v148_v30 = vshrl.u32 %v147_v29, 16 }
  0x4b   : > { %v149_v31 = vxor.u32 %v148_v30, %v147_v29 }
  0x4d   : > { %v150_v32 = vmul.u32 2246822507, %v149_v31 }
  0x4f   : > { %v151_v33 = vshrl.u32 %v150_v32, 13 }
  0x51   : > { %v152_v34 = vxor.u32 %v151_v33, %v150_v32 }
  0x53   : > { %v153_v35 = vmul.u32 3266489909, %v152_v34 }
  0x55   : > { %v154_v36 = vshrl.u32 %v153_v35, 16 }
  0x57   : > { %v155_v37 = vxor.u32 %v154_v36, %v153_v35 }
  0x59   : > { %v156_v38 = vshrl.u32 %v155_v37, 9 }
  0x5b   : > { %v157_v39 = vor.u32 1065353216, %v156_v38 }
  0x5d   : > { %v310_v40 = vadd.f32 -1.0, %v157_v39 }
  0x5f   : > { %v160_v41 = vmax.f32 %v310_v40, 1e-20 }
  0x61   : > { %353 = vlog2.f32 %v160_v41 }
  0x6b   : > { %v354_v42 = vpop.eup %353 }
  0x6c   : > { %v162_v43 = vmul.f32 0.6931472, %v354_v42 }
  0x6e   : > { %v163_v44 = vsub.f32 0.0, %v162_v43 }
  0x70   : > { %v164_v45 = vmax.f32 %v163_v44, 1e-20 }
  0x72   : > { %355 = vlog2.f32 %v164_v45 }
  0x7c   : > { %v356_v46 = vpop.eup %355 }
  0x7d   : > { %v166_v47 = vmul.f32 0.6931472, %v356_v46 }
  0x7f   : > { %v167_v48 = vsub.f32 0.0, %v166_v47 }
  0xca   : > { %v169_v1 = vpop.xlane.xlu0 %168 }
  0xcb   : > { %vm170_vm0 = vcmp.ge.f32.partialorder %v553_v0, %v169_v1 }
  0xcc   : > { %v171_v2 = vsel %vm170_vm0, -inf, %v553_v0 }
  0xcd   : > { %172 = vmax.xlane.f32.xlu0 %v171_v2 }
 0x15a   : > { %v173_v3 = vpop.xlane.xlu0 %172 }
 0x15b   : > { %vm174_vm1 = vcmp.ge.f32.partialorder %v171_v2, %v173_v3 }
 0x15c   : > { %v175_v4 = vsel %vm174_vm1, -inf, %v171_v2 }
 0x15d   : > { %176 = vmax.xlane.f32.xlu1 %v175_v4 }
 0x1ea   : > { %v177_v5 = vpop.xlane.xlu1 %176 }
 0x1eb   : > { %vm178_vm2 = vcmp.ge.f32.partialorder %v175_v4, %v177_v5 }
 0x1ec   : > { %v179_v6 = vsel %vm178_vm2, -inf, %v175_v4 }
 0x1ed   : > { %180 = vmax.xlane.f32.xlu1 %v179_v6 }
 0x27a   : > { %v181_v7 = vpop.xlane.xlu1 %180 }
 0x27b   : > { %vm182_vm3 = vcmp.ge.f32.partialorder %v179_v6, %v181_v7 }
 0x27c   : > { %v183_v8 = vsel %vm182_vm3, -inf, %v179_v6 }
 0x27d   : > { %184 = vmax.xlane.f32.xlu0 %v183_v8 }
 0x30a   : > { %v185_v9 = vpop.xlane.xlu0 %184 }
 0x30b   : > { %vm186_vm4 = vcmp.ge.f32.partialorder %v183_v8, %v185_v9 }
 0x30c   : > { %v187_v10 = vsel %vm186_vm4, -inf, %v183_v8 }
 0x30d   : > { %188 = vmax.xlane.f32.xlu1 %v187_v10 }
 0x39a   : > { %v189_v11 = vpop.xlane.xlu1 %188 }
 0x39b   : > { %vm190_vm5 = vcmp.ge.f32.partialorder %v187_v10, %v189_v11 }
 0x39c   : > { %v191_v12 = vsel %vm190_vm5, -inf, %v187_v10 }
 0x39d   : > { %192 = vmax.xlane.f32.xlu0 %v191_v12 }
 0x42a   : > { %v193_v13 = vpop.xlane.xlu0 %192 }
 0x42b   : > { %vm194_vm6 = vcmp.ge.f32.partialorder %v191_v12, %v193_v13 }
 0x42c   : > { %v195_v14 = vsel %vm194_vm6, -inf, %v191_v12 }
 0x42d   : > { %196 = vmax.xlane.f32.xlu1 %v195_v14 }
 0x4ba   : > { %v197_v15 = vpop.xlane.xlu1 %196 }
 0x4bb   : > { %vm198_vm7 = vcmp.ge.f32.partialorder %v195_v14, %v197_v15 }
 0x4bc   : > { %v199_v16 = vsel %vm198_vm7, -inf, %v195_v14 }
 0x4bd   : > { %200 = vmax.xlane.f32.xlu0 %v199_v16 }
 0x54a   : > { %v201_v17 = vpop.xlane.xlu0 %200 }
 0x54b   : > { %vm202_vm8 = vcmp.ge.f32.partialorder %v199_v16, %v201_v17 }
 0x54c   : > { %v203_v18 = vsel %vm202_vm8, -inf, %v199_v16 }
 0x54d   : > { %204 = vmax.xlane.f32.xlu1 %v203_v18 }
 0x5da   : > { %v205_v19 = vpop.xlane.xlu1 %204 }
 0x5db   : > { %vm206_vm9 = vcmp.ge.f32.partialorder %v203_v18, %v205_v19 }
 0x5dc   : > { %v207_v20 = vsel %vm206_vm9, -inf, %v203_v18 }
 0x5dd   : > { %208 = vmax.xlane.f32.xlu0 %v207_v20 }
 0x66a   : > { %v209_v21 = vpop.xlane.xlu0 %208 }
 0x66b   : > { %vm210_vm10 = vcmp.ge.f32.partialorder %v207_v20, %v209_v21 }
 0x66c   : > { %v211_v22 = vsel %vm210_vm10, -inf, %v207_v20 }
 0x66d   : > { %212 = vmax.xlane.f32.xlu1 %v211_v22 }
 0x6fa   : > { %v213_v49 = vpop.xlane.xlu1 %212 }
 0x6fb   : > { %vm214_vm11 = vcmp.ge.f32.partialorder %v553_v0, %v213_v49 }
 0x6fc   : > { %v215_v50 = vsel %vm214_vm11, %v553_v0, -inf }
 0x6fd   : > { %v216_v51 = vadd.f32 %v215_v50, %v167_v48 }
 0x6ff   : > { %217 = vmax.xlane.f32.xlu0 %v216_v51 }
 0x78c   : > { %v218_v52 = vpop.xlane.xlu0 %217 }
 0x78d   : > { %vm219_vm12 = vcmp.eq.f32.partialorder %v216_v51, %v218_v52 }
 0x78e   : > { %v220_v53 = vsel %vm219_vm12, %v142_v27, 128 }
 0x78f   : > { %v222_v54 = vshra.s32 %v220_v53, 16  ;;  %v221_v56 = vand.u32 65535, %v220_v53 }
 0x791   : > { %v224_v55 = vcvt.s32.f32 %v222_v54  ;;  %v223_v58 = vcvt.s32.f32 %v221_v56 }
 0x793   : > { %225 = vmin.xlane.f32.xlu1 %v224_v55 }
 0x820   : > { %v226_v57 = vpop.xlane.xlu1 %225 }
 0x821   : > { %vm227_vm13 = vcmp.eq.f32.partialorder %v224_v55, %v226_v57  ;;  %v232_v60 = vcvt.f32.s32 %v226_v57 }
 0x822   : > { %v228_v59 = vsel %vm227_vm13, %v223_v58, inf }
 0x823   : > { %229 = vmin.xlane.f32.xlu0 %v228_v59  ;;  %v233_v62 = vshll.u32 %v232_v60, 16 }
 0x8b0   : > { %v230_v61 = vpop.xlane.xlu0 %229 }
 0x8b1   : > { %v231_v63 = vcvt.f32.s32 %v230_v61 }
 0x8b3   : > { %v234_v0 = vadd.s32 %v233_v62, %v231_v63 }
 0x8b5   : > { %236 = vst.msk [vmem:[%s136_s5] sm:$0xff] %vm235_vm14, %v234_v0 }
 0x8b6 PF: > { %p16_p11 = scmp.ge.s32.totalorder %s486_s23, 6   ;;  %s586_s19 = smov %s425_s20 }
 0x8b7   : > { %s587_s20 = smov %s429_s21  ;;  %s588_s21 = smov %s496_s26 }
 0x8b8   : > { %s589_s22 = smov %s486_s23  ;;  %18 = sbr.rel (!%p16_p11) target bundleno = 15 (0xf), region = 64 }
 0x8bf   :  { %256 = vsyncpa [#allocation5], 1 }
 0x8c0   :  { %258 = vsyncpa [#allocation5 + $0x1], 1 }

</bundles_post_ra>
